<compile_context>
chip_gen: v7x
topology: tpu7x:2x2x1
jax: 0.10.0
libtpu: 0.0.40
codegen_flags: <defaults>
</compile_context>

<pallas_src>
import jax
import jax.numpy as jnp
from jax.experimental import pallas as pl
from jax.experimental.pallas import tpu as pltpu

_LANES = 128


def _round_up(x, m):
    return ((x + m - 1) // m) * m


def dqn_kernel(x_ref, w1_ref, b1_ref, w2_ref, b2_ref, o_ref):
    # hidden = relu(x @ W1 + b1)       (dropout == identity in eval mode)
    h = jnp.dot(x_ref[...], w1_ref[...], preferred_element_type=jnp.float32)
    h = jnp.maximum(h + b1_ref[...], 0.0)
    # out = h @ W2 + b2                (dropout == identity in eval mode)
    out = jnp.dot(h, w2_ref[...], preferred_element_type=jnp.float32)
    o_ref[...] = (out + b2_ref[...]).astype(o_ref.dtype)


def prepare_params(w1, b1, w2, b2):
    """One-time parameter prep: call once, reuse across all forwards.

    Pads the hidden dimension up to a multiple of 128 with zero columns in (W1, b1) and
    zero rows in W2, so the in-kernel epilogue runs on full vregs and the second matmul
    gets K=128. The output dimension is left untouched. Weights are stored pre-transposed
    as (in_features, out_features); biases as (1, out_features). Everything kept in f32.
    """
    in_dim, hid = w1.shape
    out_dim = w2.shape[1]
    hid_p = _round_up(hid, _LANES)
    if hid_p != hid:
        w1 = jnp.zeros((in_dim, hid_p), jnp.float32).at[:, :hid].set(w1)
        b1 = jnp.zeros((1, hid_p), jnp.float32).at[:, :hid].set(b1)
        w2 = jnp.zeros((hid_p, out_dim), jnp.float32).at[:hid, :].set(w2)
    return (w1.astype(jnp.float32), b1.astype(jnp.float32),
            w2.astype(jnp.float32), b2.astype(jnp.float32))


def dqn_forward(x, params, *, batch_tile=None, small_batch_max=256, max_tile=1024):
    """Fused two-layer MLP (eval-mode DQN forward). `params` from prepare_params()."""
    w1, b1, w2, b2 = params
    B, in_dim = x.shape
    hid_p = w1.shape[1]
    out_dim = w2.shape[1]

    if B <= small_batch_max:
        # Small batch: everything fits in VMEM -> grid-free call, no pipeline
        # scaffolding, output written at its true (B, out_dim) shape.
        return pl.pallas_call(
            dqn_kernel,
            out_shape=jax.ShapeDtypeStruct((B, out_dim), jnp.float32),
            in_specs=[pl.BlockSpec(memory_space=pltpu.MemorySpace.VMEM)] * 5,
            out_specs=pl.BlockSpec(memory_space=pltpu.MemorySpace.VMEM),
        )(x, w1, b1, w2, b2)

    if batch_tile is None:
        # Big sequential tiles (v5e/v6e roofline), but >= 2 parallel grid steps so the
        # "parallel" axis can be split across both TensorCores on v7x.
        batch_tile = min(max_tile, _round_up(pl.cdiv(B, 2), 8))
    grid = (pl.cdiv(B, batch_tile),)  # ragged tail handled by Pallas (OOB rows dropped)

    return pl.pallas_call(
        dqn_kernel,
        out_shape=jax.ShapeDtypeStruct((B, out_dim), jnp.float32),
        grid=grid,
        in_specs=[
            pl.BlockSpec((batch_tile, in_dim), lambda i: (i, 0)),
            # Constant index_maps -> weights/biases stay VMEM-resident across the grid.
            pl.BlockSpec((in_dim, hid_p), lambda i: (0, 0)),
            pl.BlockSpec((1, hid_p), lambda i: (0, 0)),
            pl.BlockSpec((hid_p, out_dim), lambda i: (0, 0)),
            pl.BlockSpec((1, out_dim), lambda i: (0, 0)),
        ],
        out_specs=pl.BlockSpec((batch_tile, out_dim), lambda i: (i, 0)),
        compiler_params=pltpu.CompilerParams(
            dimension_semantics=("parallel",)),
    )(x, w1, b1, w2, b2)


def init_params(key, input_dim, hidden_dim, output_dim):
    """PyTorch-style init: U(-1/sqrt(fan_in), 1/sqrt(fan_in)).
    Weights stored transposed: (in_features, out_features)."""
    k1, k2, k3, k4 = jax.random.split(key, 4)
    bound1 = 1.0 / jnp.sqrt(input_dim)
    bound2 = 1.0 / jnp.sqrt(hidden_dim)
    w1 = jax.random.uniform(k1, (input_dim, hidden_dim), jnp.float32, -bound1, bound1)
    b1 = jax.random.uniform(k2, (1, hidden_dim), jnp.float32, -bound1, bound1)
    w2 = jax.random.uniform(k3, (hidden_dim, output_dim), jnp.float32, -bound2, bound2)
    b2 = jax.random.uniform(k4, (1, output_dim), jnp.float32, -bound2, bound2)
    return w1, b1, w2, b2


def dqn_reference(x, w1, b1, w2, b2):
    """Plain-JAX f32 reference (eval-mode: dropout == identity)."""
    h = jnp.maximum(jnp.dot(x, w1) + b1, 0.0)
    return jnp.dot(h, w2) + b2


if __name__ == "__main__":
    key = jax.random.PRNGKey(0)
    kx, kp, kb = jax.random.split(key, 3)

    input_dim, hidden_dim, output_dim = 16, 32, 8
    w1, b1, w2, b2 = init_params(kp, input_dim, hidden_dim, output_dim)
    params = prepare_params(w1, b1, w2, b2)   # one-time pad/cast, reused below

    # Tolerances cover possible MXU default-precision (bf16-pass) differences between
    # the in-kernel dot and the XLA reference dot; real bugs would be O(0.1-1).
    TOL = 1e-2

    # --- small batch: grid-free, fully VMEM-resident path ---
    batch = 8
    x = jax.random.normal(kx, (batch, input_dim), jnp.float32)
    out = jax.block_until_ready(dqn_forward(x, params))
    ref = dqn_reference(x, w1, b1, w2, b2)
    assert out.shape == (batch, output_dim)
    assert jnp.allclose(out, ref, atol=TOL, rtol=TOL)

    # --- larger, ragged batch: batch-tiled "parallel" grid path (2 grid steps) ---
    big_batch = 300                    # not a multiple of the tile -> exercises OOB drop
    xb = jax.random.normal(kb, (big_batch, input_dim), jnp.float32)
    out_b = jax.block_until_ready(dqn_forward(xb, params))
    ref_b = dqn_reference(xb, w1, b1, w2, b2)
    assert out_b.shape == (big_batch, output_dim)
    assert jnp.allclose(out_b, ref_b, atol=TOL, rtol=TOL)

    print("KERNEL_OK")
</pallas_src>

<mosaic_0001>
module attributes {stable_mosaic.version = 11 : i64} {
  func.func @dqn_kernel(%arg0: memref<8x16xf32, #tpu.memory_space<vmem>>, %arg1: memref<16x128xf32, #tpu.memory_space<vmem>>, %arg2: memref<1x128xf32, #tpu.memory_space<vmem>>, %arg3: memref<128x8xf32, #tpu.memory_space<vmem>>, %arg4: memref<1x8xf32, #tpu.memory_space<vmem>>, %arg5: memref<8x8xf32, #tpu.memory_space<vmem>>) attributes {dimension_semantics = [], scalar_prefetch = 0 : i64, scratch_operands = 0 : i64, tpu.core_type = #tpu.core_type<tc>} {
    %c0 = arith.constant 0 : index
    %c0_0 = arith.constant 0 : index
    %0 = vector.load %arg0[%c0, %c0_0] : memref<8x16xf32, #tpu.memory_space<vmem>>, vector<8x16xf32>
    %c0_1 = arith.constant 0 : index
    %c0_2 = arith.constant 0 : index
    %1 = vector.load %arg1[%c0_1, %c0_2] : memref<16x128xf32, #tpu.memory_space<vmem>>, vector<16x128xf32>
    %cst = arith.constant dense<0.000000e+00> : vector<8x128xf32>
    %2 = tpu.matmul %0, %1, %cst {dimension_numbers = #tpu.dot_dimension_numbers<[1], [0], [0], [1], [0, 0, 1, 1], [], []>} : vector<8x16xf32>, vector<16x128xf32>, vector<8x128xf32> -> vector<8x128xf32>
    %c0_3 = arith.constant 0 : index
    %c0_4 = arith.constant 0 : index
    %3 = vector.load %arg2[%c0_3, %c0_4] : memref<1x128xf32, #tpu.memory_space<vmem>>, vector<1x128xf32>
    %4 = vector.broadcast %3 : vector<1x128xf32> to vector<8x128xf32>
    %5 = arith.addf %2, %4 : vector<8x128xf32>
    %cst_5 = arith.constant 0.000000e+00 : f32
    %6 = vector.broadcast %cst_5 : f32 to vector<8x128xf32>
    %7 = arith.maximumf %5, %6 : vector<8x128xf32>
    %c0_6 = arith.constant 0 : index
    %c0_7 = arith.constant 0 : index
    %8 = vector.load %arg3[%c0_6, %c0_7] : memref<128x8xf32, #tpu.memory_space<vmem>>, vector<128x8xf32>
    %cst_8 = arith.constant dense<0.000000e+00> : vector<8x8xf32>
    %9 = tpu.matmul %7, %8, %cst_8 {dimension_numbers = #tpu.dot_dimension_numbers<[1], [0], [0], [1], [0, 0, 1, 1], [], []>} : vector<8x128xf32>, vector<128x8xf32>, vector<8x8xf32> -> vector<8x8xf32>
    %c0_9 = arith.constant 0 : index
    %c0_10 = arith.constant 0 : index
    %10 = vector.load %arg4[%c0_9, %c0_10] : memref<1x8xf32, #tpu.memory_space<vmem>>, vector<1x8xf32>
    %11 = vector.broadcast %10 : vector<1x8xf32> to vector<8x8xf32>
    %12 = arith.addf %9, %11 : vector<8x8xf32>
    %c0_11 = arith.constant 0 : index
    %c0_12 = arith.constant 0 : index
    %13 = vector.load %arg5[%c0_11, %c0_12] : memref<8x8xf32, #tpu.memory_space<vmem>>, vector<8x8xf32>
    tpu.vector_store %arg5[%c0_11, %c0_12], %12 {strides = array<i32>} : memref<8x8xf32, #tpu.memory_space<vmem>>, vector<8x8xf32>,
    return
  }
}

</mosaic_0001>

<bundles_post_ra>
// kernel: tpu_custom_call.1
= control target key start
LH: loop header
LB: loop body
LE: loop exit
PB: predicated region body
PF: predicated region fallthrough
CT: control target
= control target key end

     0   :  { %v335_v2 = vmov 0.0|0.0   ;;  %vm336_vm0 = vmmov 0   ;;  %v337_v4 = vmov 0.0   ;;  %vm31_vm1 = vcmask 130048   ;;  %s444_s0 = inlined_call_operand.vmem [shape: f32[8,16], index: 0, kind: input, shape index: {}]   ;;  %s445_s1 = inlined_call_operand.vmem [shape: f32[16,128], index: 1, kind: input, shape index: {}]   ;;  %s446_s2 = inlined_call_operand.vmem [shape: f32[1,128], index: 2, kind: input, shape index: {}]   ;;  %s447_s3 = inlined_call_operand.vmem [shape: f32[128,8], index: 3, kind: input, shape index: {}]   ;;  %s448_s4 = inlined_call_operand.vmem [shape: f32[1,8], index: 4, kind: input, shape index: {}]   ;;  %s449_s5 = inlined_call_operand.hbm [shape: f32[8,8], index: 5, kind: output, shape index: {}]  }
   0x1   :  { %v22_v0 = vld [vmem:[%s445_s1] sm:$0xff]  ;;  %v23_v1 = vld [vmem:[%s445_s1 + $0x8] sm:$0xff]  ;;  %280 = vmatprep.subr.bf16.mxu0 %v335_v2  ;;  %242 = vmatprep.mubr.msk.f32.mxu0 %vm336_vm0, %v337_v4  ;;  %v108_v7 = vld [vmem:[%s447_s3 + $0x10] sm:$0xff] }
   0x2   :  { %v281_v3 = vpack.c.bf16 %v23_v1, %v22_v0  ;;  %v106_v5 = vld [vmem:[%s447_s3] sm:$0xff]  ;;  %v107_v6 = vld [vmem:[%s447_s3 + $0x8] sm:$0xff]  ;;  %283 = vmatprep.subr.bf16.mxu1 %v335_v2  ;;  %v109_v9 = vld [vmem:[%s447_s3 + $0x18] sm:$0xff]  ;;  %277 = vmatprep.mubr.msk.f32.mxu1 %vm336_vm0, %v337_v4 }
   0x3   :  { %v284_v8 = vpack.c.bf16 %v107_v6, %v106_v5  ;;  %v21_v10 = vld [vmem:[%s444_s0] sm:$0xff]  ;;  %v287_v11 = vpack.c.bf16 %v109_v9, %v108_v7  ;;  %v111_v13 = vld [vmem:[%s447_s3 + $0x28] sm:$0xff] }
   0x4   :  { %282 = vmatpush3.bf16.msra.mxu0 %v281_v3  ;;  %v110_v12 = vld [vmem:[%s447_s3 + $0x20] sm:$0xff] }
   0x5   :  { %285 = vmatpush3.bf16.msra.mxu1 %v284_v8 }
   0x6   :  { %286 = vmatprep.subr.bf16.mxu1 %v335_v2 }
   0x7   :  { %243 = vmatmul.mubr.msk.f32.vlgmr.msra.gmra.mrb[0].mxu0 %vm31_vm1, %v21_v10 }
   0x8   :  { %10 = vsyncpa [#allocation3], 0  ;;  %v290_v14 = vpack.c.bf16 %v111_v13, %v110_v12  ;;  %v112_v15 = vld [vmem:[%s447_s3 + $0x30] sm:$0xff]  ;;  %v113_v16 = vld [vmem:[%s447_s3 + $0x38] sm:$0xff]  ;;  %s338_s7 = smov [#allocation2]   ;;  %vm199_vm2 = vcmask 64512  }
   0x9   :  { %288 = vmatpush3.bf16.msra.mxu1 %v287_v11  ;;  %v293_v17 = vpack.c.bf16 %v113_v16, %v112_v15  ;;  %v114_v18 = vld [vmem:[%s447_s3 + $0x40] sm:$0xff]  ;;  %v115_v19 = vld [vmem:[%s447_s3 + $0x48] sm:$0xff]  ;;  %v116_v21 = vld [vmem:[%s447_s3 + $0x50] sm:$0xff]  ;;  %s207_s8 = sshll.u32 %s338_s7, 4  ;;  %s208_s8 = int_to_ptr.vmem [resolvable:$true] %s207_s8 }
   0xa   :  { %289 = vmatprep.subr.bf16.mxu1 %v335_v2  ;;  %v296_v20 = vpack.c.bf16 %v115_v19, %v114_v18  ;;  %v117_v22 = vld [vmem:[%s447_s3 + $0x58] sm:$0xff]  ;;  %v118_v24 = vld [vmem:[%s447_s3 + $0x60] sm:$0xff]  ;;  %v119_v25 = vld [vmem:[%s447_s3 + $0x68] sm:$0xff]  ;;  %p316_p1 = scmp.lt.s32.totalorder %s208_s8, %s208_s8 }
   0xb   :  { %v299_v23 = vpack.c.bf16 %v117_v22, %v116_v21  ;;  %v302_v26 = vpack.c.bf16 %v119_v25, %v118_v24  ;;  %v120_v27 = vld [vmem:[%s447_s3 + $0x70] sm:$0xff]  ;;  %v121_v28 = vld [vmem:[%s447_s3 + $0x78] sm:$0xff]  ;;  %v215_v30 = vld [vmem:[%s446_s2] ss:$0 sm:$0xff]  ;;  %s311_s3 = scalar_lea.vmem %s208_s8, 128 }
   0xc   :  { %v305_v29 = vpack.c.bf16 %v121_v28, %v120_v27  ;;  %v217_v35 = vld [vmem:[%s448_s4] ss:$0 sm:$0xff]  ;;  %p312_p0 = scmp.ne.s32.totalorder %s208_s8, %s311_s3  ;;  %p317_p2 = scmp.lt.s32.totalorder %s311_s3, %s311_s3 }
   0xd   :  { %291 = vmatpush3.bf16.msra.mxu1 %v290_v14 }
   0xe   :  { %292 = vmatprep.subr.bf16.mxu1 %v335_v2  ;;  %p318_p3 = por %p317_p2, %p316_p1 }
  0x10   :  { %p319_p4 = pnand %p318_p3, %p312_p0 }
  0x11   :  { %294 = vmatpush3.bf16.msra.mxu1 %v293_v17 }
  0x12   :  { %295 = vmatprep.subr.bf16.mxu1 %v335_v2 }
  0x15   :  { %297 = vmatpush3.bf16.msra.mxu1 %v296_v20 }
  0x16   :  { %298 = vmatprep.subr.bf16.mxu1 %v335_v2 }
  0x19   :  { %300 = vmatpush3.bf16.msra.mxu1 %v299_v23 }
  0x1a   :  { %301 = vmatprep.subr.bf16.mxu1 %v335_v2 }
  0x1d   :  { %303 = vmatpush3.bf16.msra.mxu1 %v302_v26 }
  0x1e   :  { %304 = vmatprep.subr.bf16.mxu1 %v335_v2 }
  0x21   :  { %306 = vmatpush3.bf16.msra.mxu1 %v305_v29 }
  0xda   :  { %v101_v31 = vpop.f32.mrb[0].mxu0 }
  0xdb   :  { %v102_v32 = vadd.f32 %v215_v30, %v101_v31  ;;  %v244_v33 = vpop.f32.mrb[1].mxu0 }
  0xdd   :  { %v105_v34 = vmax.f32 %v102_v32, 0.0 }
  0xdf   :  { %278 = vmatmul.mubr.f32.vlgmr.msra.gmra.mrb[0].mxu1 %v105_v34 }
 0x1b2   :  { %v195_v36 = vpop.f32.mrb[0].mxu1 }
 0x1b3   :  { %v196_v37 = vadd.f32 %v217_v35, %v195_v36  ;;  %v279_v38 = vpop.f32.mrb[1].mxu1 }
 0x1b5   :  { %200 = vst.msk [vmem:[#allocation2] sm:$0xff] %vm199_vm2, %v196_v37 }
 0x1b6   :  { %322 = shalt.err (!%p319_p4)
}
 0x1b7   :  { %s323_s10 = scalar_lea.hbm %s449_s5, 128 }
 0x1b8   :  { %p324_p5 = scmp.ne.s32.totalorder %s449_s5, %s323_s10  ;;  %p327_p6 = scmp.lt.u32.totalorder %s323_s10, %s449_s5 }
 0x1ba   :  { %p329_p7 = pnand %p327_p6, %p324_p5 }
 0x1bc   :  { %332 = shalt.err (!%p329_p7)
}
 0x1bd   :  { %210 = dma.vmem_to_hbm [thread:$0]  %s208_s8, 128, %s449_s5, [#allocation3]  }
 0x1be   :  { %333 = dma.done.wait [#allocation3], 128  }
 0x1bf   :  { %334 = vsyncadd [#allocation3], 4294967168 }
 0x1c0   :  { %214 = vsyncpa [#allocation3], 1 }

</bundles_post_ra>
